<compile_context>
chip_gen: v7x
topology: tpu7x:2x2x1
jax: 0.10.0
libtpu: 0.0.40
codegen_flags: <defaults>
</compile_context>

<pallas_src>
import jax
import jax.numpy as jnp
from jax.experimental import pallas as pl
from jax.experimental.pallas import tpu as pltpu

BN_EPS = 1e-5


def _round_up(v, m):
    return (v + m - 1) // m * m


def _make_kernel(batch, tile_b, bn_eps):
    """batch = true (unpadded) batch size; tile_b = rows per grid step."""
    inv_b = 1.0 / batch
    needs_mask = (batch % tile_b) != 0  # padded rows exist in the last tile

    def kernel(x_ref, w1_ref, g1_ref, bt1_ref, w2_ref, g2_ref, bt2_ref,
               w3_ref, b3_ref, out_ref,
               zc_ref, stat1_a, stat1_b, stat2_a, stat2_b):
        # stat*_a / stat*_b: per-feature sum / sum-of-squares during the stats
        # pass; after finalization they hold the fused BN scale / shift.
        p = pl.program_id(0)   # pass: 0 = BN1 stats, 1 = BN2 stats, 2 = output
        i = pl.program_id(1)   # batch tile

        # ---- pass-boundary bookkeeping (first tile of each pass) ----
        @pl.when(jnp.logical_and(p == 0, i == 0))
        def _():
            stat1_a[...] = jnp.zeros_like(stat1_a)
            stat1_b[...] = jnp.zeros_like(stat1_b)

        @pl.when(jnp.logical_and(p == 1, i == 0))
        def _():
            mu = stat1_a[...] * inv_b
            var = stat1_b[...] * inv_b - mu * mu          # E[z^2] - mu^2
            scale = g1_ref[...] * jax.lax.rsqrt(var + bn_eps)
            stat1_a[...] = scale                          # fused BN1 scale
            stat1_b[...] = bt1_ref[...] - mu * scale      # fused BN1 shift
            stat2_a[...] = jnp.zeros_like(stat2_a)
            stat2_b[...] = jnp.zeros_like(stat2_b)

        @pl.when(jnp.logical_and(p == 2, i == 0))
        def _():
            mu = stat2_a[...] * inv_b
            var = stat2_b[...] * inv_b - mu * mu
            scale = g2_ref[...] * jax.lax.rsqrt(var + bn_eps)
            stat2_a[...] = scale                          # fused BN2 scale
            stat2_b[...] = bt2_ref[...] - mu * scale      # fused BN2 shift

        @pl.when(p == 0)
        def _():
            # Linear bias b1 omitted: cancelled exactly by BN mean subtraction.
            z1 = jnp.dot(x_ref[...], w1_ref[...],
                         preferred_element_type=jnp.float32)
            zc_ref[i] = z1                                # cache z1 for pass 1
            stat1_a[...] += jnp.sum(z1, axis=0, keepdims=True)
            stat1_b[...] += jnp.sum(z1 * z1, axis=0, keepdims=True)

        @pl.when(p == 1)
        def _():
            z1 = zc_ref[i]
            a1 = jnp.maximum(z1 * stat1_a[...] + stat1_b[...], 0.0)
            if needs_mask:
                # keep padded batch rows out of the z2 statistics
                row = (jax.lax.broadcasted_iota(jnp.int32, (tile_b, 1), 0)
                       + i * tile_b)
                a1 = jnp.where(row < batch, a1, 0.0)
            z2 = jnp.dot(a1.astype(jnp.bfloat16), w2_ref[...],
                         preferred_element_type=jnp.float32)
            zc_ref[i] = z2                                # reuse cache for z2
            stat2_a[...] += jnp.sum(z2, axis=0, keepdims=True)
            stat2_b[...] += jnp.sum(z2 * z2, axis=0, keepdims=True)

        @pl.when(p == 2)
        def _():
            z2 = zc_ref[i]
            a2 = jnp.maximum(z2 * stat2_a[...] + stat2_b[...], 0.0)
            # Linear(h, 1) emitted lane-dense: (1,Hp) x (TILE_B,Hp)^T -> (1,TILE_B)
            z3 = jax.lax.dot_general(
                w3_ref[...], a2.astype(jnp.bfloat16),
                dimension_numbers=(((1,), (1,)), ((), ())),
                preferred_element_type=jnp.float32) + b3_ref[...]
            out_ref[...] = z3.astype(out_ref.dtype)

    return kernel


def adversarial_sphere_forward(x, params, *, tile_b=2048):
    """x: (B, n) float32; params: dict of arrays (see init_params)."""
    B, n = x.shape
    h = params["w1"].shape[1]
    f32 = jnp.float32
    bf16 = jnp.bfloat16

    # 128-lane padding; 256-aligned when the dim exceeds one MXU tile (v6e/v7x).
    Np = _round_up(n, 256) if n > 128 else _round_up(n, 128)
    Hp = _round_up(h, 256) if h > 128 else _round_up(h, 128)

    if B <= tile_b:
        TILE_B = _round_up(B, 8)          # single batch tile (block = full array)
    else:
        TILE_B = _round_up(tile_b, 128)   # lane-dense out blocks need %128 == 0
    B_pad = _round_up(B, TILE_B)
    nb = B_pad // TILE_B

    # Zero padding: padded gamma/beta/weight entries keep padded features at
    # exactly 0 end-to-end; padded batch rows are zero (no bias) so they add
    # nothing to the z1 statistics.
    xp  = jnp.zeros((B_pad, Np), bf16).at[:B, :n].set(x.astype(bf16))
    w1  = jnp.zeros((Np, Hp), bf16).at[:n, :h].set(params["w1"].astype(bf16))
    g1  = jnp.zeros((1, Hp), f32).at[:, :h].set(params["g1"])
    bt1 = jnp.zeros((1, Hp), f32).at[:, :h].set(params["beta1"])
    w2  = jnp.zeros((Hp, Hp), bf16).at[:h, :h].set(params["w2"].astype(bf16))
    g2  = jnp.zeros((1, Hp), f32).at[:, :h].set(params["g2"])
    bt2 = jnp.zeros((1, Hp), f32).at[:, :h].set(params["beta2"])
    w3  = jnp.zeros((1, Hp), bf16).at[:, :h].set(
        params["w3"].reshape(1, h).astype(bf16))
    b3  = params["b3"].reshape(1, 1).astype(f32)

    kernel = _make_kernel(B, TILE_B, BN_EPS)
    resident = lambda p, i: (0, 0)             # weights stay in VMEM

    # VMEM budget: z-cache + double-buffered x tile + double-buffered weights.
    vmem_needed = (nb * TILE_B * Hp * 4
                   + 2 * TILE_B * Np * 2
                   + 2 * (Np * Hp + Hp * Hp + Hp) * 2
                   + 10 * Hp * 4
                   + 2 * TILE_B * 4 + (1 << 20))
    vmem_limit = int(min(max(2 * vmem_needed, 32 << 20), 64 << 20))

    cost = pl.CostEstimate(
        flops=int(2 * B_pad * (Np * Hp + Hp * Hp + Hp)),
        transcendentals=int(2 * Hp),
        bytes_accessed=int(xp.size * 2 + (w1.size + w2.size + w3.size) * 2
                           + (g1.size + bt1.size + g2.size + bt2.size + 1) * 4
                           + B_pad * 4),
    )

    out = pl.pallas_call(
        kernel,
        out_shape=jax.ShapeDtypeStruct((1, B_pad), f32),
        grid_spec=pltpu.PrefetchScalarGridSpec(
            num_scalar_prefetch=0,
            grid=(3, nb),                      # (pass, batch tile)
            in_specs=[
                # x is only streamed during pass 0; afterwards the block index
                # freezes at 0 so no further HBM DMA is issued.
                pl.BlockSpec((TILE_B, Np),
                             lambda p, i: (jnp.where(p == 0, i, 0), 0)),
                pl.BlockSpec((Np, Hp), resident),                  # w1 (bf16)
                pl.BlockSpec((1, Hp), resident),                   # gamma1
                pl.BlockSpec((1, Hp), resident),                   # beta1
                pl.BlockSpec((Hp, Hp), resident),                  # w2 (bf16)
                pl.BlockSpec((1, Hp), resident),                   # gamma2
                pl.BlockSpec((1, Hp), resident),                   # beta2
                pl.BlockSpec((1, Hp), resident),                   # w3 (row, bf16)
                pl.BlockSpec((1, 1), resident),                    # b3
            ],
            # Lane-dense output; block index only advances in pass 2 so every
            # output block is written back exactly once, with real data.
            out_specs=pl.BlockSpec((1, TILE_B),
                                   lambda p, i: (0, jnp.where(p == 2, i, 0))),
            scratch_shapes=[
                pltpu.VMEM((nb, TILE_B, Hp), f32),   # z1 / z2 cache
                pltpu.VMEM((1, Hp), f32),            # stat1_a (sum -> scale)
                pltpu.VMEM((1, Hp), f32),            # stat1_b (sumsq -> shift)
                pltpu.VMEM((1, Hp), f32),            # stat2_a
                pltpu.VMEM((1, Hp), f32),            # stat2_b
            ],
        ),
        compiler_params=pltpu.CompilerParams(
            dimension_semantics=("arbitrary", "arbitrary"),
            vmem_limit_bytes=vmem_limit),
        cost_estimate=cost,
    )(xp, w1, g1, bt1, w2, g2, bt2, w3, b3)

    return out[0, :B].reshape(B, 1)


def init_params(key, n, h):
    """Deterministic synthetic init (PyTorch-like scales; gamma=1, beta=0)."""
    k1, k2, k3, k4, k5, k6 = jax.random.split(key, 6)
    bound1 = 1.0 / jnp.sqrt(n)
    bound2 = 1.0 / jnp.sqrt(h)
    return {
        # Linear(n, h): stored transposed -> (n, h); bias as (1, h)
        "w1": jax.random.uniform(k1, (n, h), jnp.float32, -bound1, bound1),
        "b1": jax.random.uniform(k2, (1, h), jnp.float32, -bound1, bound1),
        "g1": jnp.ones((1, h), jnp.float32),
        "beta1": jnp.zeros((1, h), jnp.float32),
        # Linear(h, h)
        "w2": jax.random.uniform(k3, (h, h), jnp.float32, -bound2, bound2),
        "b2": jax.random.uniform(k4, (1, h), jnp.float32, -bound2, bound2),
        "g2": jnp.ones((1, h), jnp.float32),
        "beta2": jnp.zeros((1, h), jnp.float32),
        # Linear(h, 1)
        "w3": jax.random.uniform(k5, (h, 1), jnp.float32, -bound2, bound2),
        "b3": jax.random.uniform(k6, (1, 1), jnp.float32, -bound2, bound2),
    }


def reference_forward(x, p, mxu_dtype=jnp.float32):
    """Pure-JAX reference with PyTorch training-mode BN semantics (keeps the
    Linear biases and two-pass variance).  mxu_dtype=bfloat16 emulates the
    kernel's matmul operand precision for a tight structural check."""
    c = lambda a: a.astype(mxu_dtype).astype(jnp.float32)
    z1 = c(x) @ c(p["w1"]) + p["b1"]
    m1 = z1.mean(0, keepdims=True)
    v1 = ((z1 - m1) ** 2).mean(0, keepdims=True)
    a1 = jnp.maximum((z1 - m1) / jnp.sqrt(v1 + BN_EPS) * p["g1"] + p["beta1"], 0.0)
    z2 = c(a1) @ c(p["w2"]) + p["b2"]
    m2 = z2.mean(0, keepdims=True)
    v2 = ((z2 - m2) ** 2).mean(0, keepdims=True)
    a2 = jnp.maximum((z2 - m2) / jnp.sqrt(v2 + BN_EPS) * p["g2"] + p["beta2"], 0.0)
    return c(a2) @ c(p["w3"]) + p["b3"]


if __name__ == "__main__":
    n, h = 16, 32
    key = jax.random.PRNGKey(0)
    kx1, kx2, kp = jax.random.split(key, 3)
    params = init_params(kp, n, h)

    # ---- test 1: small batch, single tile ----
    B1 = 12
    x1 = jax.random.normal(kx1, (B1, n), jnp.float32)
    x1 = x1 / jnp.linalg.norm(x1, axis=1, keepdims=True)   # project onto spheres
    out1 = jax.block_until_ready(adversarial_sphere_forward(x1, params))
    assert out1.shape == (B1, 1)
    # tight check vs bf16-emulating reference (same matmul operand precision)
    ref1_bf16 = reference_forward(x1, params, mxu_dtype=jnp.bfloat16)
    assert jnp.allclose(out1, ref1_bf16, atol=2e-3, rtol=2e-3), "mismatch (bf16 ref)"
    # loose check vs pure-f32 module semantics (bf16 MXU rounding tolerance)
    ref1_f32 = reference_forward(x1, params)
    assert jnp.allclose(out1, ref1_f32, atol=1e-1, rtol=1e-1), "mismatch (f32 ref)"

    # ---- test 2: multi-tile path (per-tile stat accumulation + row masking) ----
    B2 = 300
    x2 = jax.random.normal(kx2, (B2, n), jnp.float32)
    x2 = x2 / jnp.linalg.norm(x2, axis=1, keepdims=True)
    out2 = jax.block_until_ready(adversarial_sphere_forward(x2, params, tile_b=128))
    assert out2.shape == (B2, 1)
    ref2_bf16 = reference_forward(x2, params, mxu_dtype=jnp.bfloat16)
    assert jnp.allclose(out2, ref2_bf16, atol=2e-3, rtol=2e-3), "tiled mismatch (bf16 ref)"
    ref2_f32 = reference_forward(x2, params)
    assert jnp.allclose(out2, ref2_f32, atol=1e-1, rtol=1e-1), "tiled mismatch (f32 ref)"

    print("KERNEL_OK")
</pallas_src>

<mosaic_0001>
module attributes {stable_mosaic.version = 11 : i64} {
  func.func @kernel(%arg0: i32, %arg1: i32, %arg2: memref<16x128xbf16, #tpu.memory_space<vmem>>, %arg3: memref<128x128xbf16, #tpu.memory_space<vmem>>, %arg4: memref<1x128xf32, #tpu.memory_space<vmem>>, %arg5: memref<1x128xf32, #tpu.memory_space<vmem>>, %arg6: memref<128x128xbf16, #tpu.memory_space<vmem>>, %arg7: memref<1x128xf32, #tpu.memory_space<vmem>>, %arg8: memref<1x128xf32, #tpu.memory_space<vmem>>, %arg9: memref<1x128xbf16, #tpu.memory_space<vmem>>, %arg10: memref<1x1xf32, #tpu.memory_space<vmem>>, %arg11: memref<1x16xf32, #tpu.memory_space<vmem>>, %arg12: memref<1x16x128xf32, #tpu.memory_space<vmem>>, %arg13: memref<1x128xf32, #tpu.memory_space<vmem>>, %arg14: memref<1x128xf32, #tpu.memory_space<vmem>>, %arg15: memref<1x128xf32, #tpu.memory_space<vmem>>, %arg16: memref<1x128xf32, #tpu.memory_space<vmem>>) attributes {dimension_semantics = [#tpu.dimension_semantics<arbitrary>, #tpu.dimension_semantics<arbitrary>], iteration_bounds = array<i64: 3, 1>, scalar_prefetch = 0 : i64, scratch_operands = 5 : i64, tpu.core_type = #tpu.core_type<tc>, window_params = [{transform_indices = @transform_0, window_bounds = array<i64: 16, 128>}, {pipeline_mode = #tpu.pipeline_mode<synchronous>, transform_indices = @transform_1, window_bounds = array<i64: 128, 128>}, {pipeline_mode = #tpu.pipeline_mode<synchronous>, transform_indices = @transform_2, window_bounds = array<i64: 1, 128>}, {pipeline_mode = #tpu.pipeline_mode<synchronous>, transform_indices = @transform_3, window_bounds = array<i64: 1, 128>}, {pipeline_mode = #tpu.pipeline_mode<synchronous>, transform_indices = @transform_4, window_bounds = array<i64: 128, 128>}, {pipeline_mode = #tpu.pipeline_mode<synchronous>, transform_indices = @transform_5, window_bounds = array<i64: 1, 128>}, {pipeline_mode = #tpu.pipeline_mode<synchronous>, transform_indices = @transform_6, window_bounds = array<i64: 1, 128>}, {pipeline_mode = #tpu.pipeline_mode<synchronous>, transform_indices = @transform_7, window_bounds = array<i64: 1, 128>}, {pipeline_mode = #tpu.pipeline_mode<synchronous>, transform_indices = @transform_8, window_bounds = array<i64: 1, 1>}, {transform_indices = @transform_9, window_bounds = array<i64: 1, 16>}]} {
    %c0_i32 = arith.constant 0 : i32
    %0 = arith.cmpi eq, %arg0, %c0_i32 : i32
    %c0_i32_0 = arith.constant 0 : i32
    %1 = arith.cmpi eq, %arg1, %c0_i32_0 : i32
    %2 = arith.andi %0, %1 : i1
    %3 = arith.extui %2 : i1 to i32
    %c0_i32_1 = arith.constant 0 : i32
    %4 = arith.cmpi ne, %3, %c0_i32_1 : i32
    scf.if %4 {
      %cst = arith.constant 0.000000e+00 : f32
      %24 = vector.broadcast %cst : f32 to vector<1x128xf32>
      %c0 = arith.constant 0 : index
      %c0_12 = arith.constant 0 : index
      %25 = vector.load %arg13[%c0, %c0_12] : memref<1x128xf32, #tpu.memory_space<vmem>>, vector<1x128xf32>
      tpu.vector_store %arg13[%c0, %c0_12], %24 {strides = array<i32>} : memref<1x128xf32, #tpu.memory_space<vmem>>, vector<1x128xf32>,
      %cst_13 = arith.constant 0.000000e+00 : f32
      %26 = vector.broadcast %cst_13 : f32 to vector<1x128xf32>
      %c0_14 = arith.constant 0 : index
      %c0_15 = arith.constant 0 : index
      %27 = vector.load %arg14[%c0_14, %c0_15] : memref<1x128xf32, #tpu.memory_space<vmem>>, vector<1x128xf32>
      tpu.vector_store %arg14[%c0_14, %c0_15], %26 {strides = array<i32>} : memref<1x128xf32, #tpu.memory_space<vmem>>, vector<1x128xf32>,
    } else {
    }
    %c1_i32 = arith.constant 1 : i32
    %5 = arith.cmpi eq, %arg0, %c1_i32 : i32
    %c0_i32_2 = arith.constant 0 : i32
    %6 = arith.cmpi eq, %arg1, %c0_i32_2 : i32
    %7 = arith.andi %5, %6 : i1
    %8 = arith.extui %7 : i1 to i32
    %c0_i32_3 = arith.constant 0 : i32
    %9 = arith.cmpi ne, %8, %c0_i32_3 : i32
    scf.if %9 {
      %c0 = arith.constant 0 : index
      %c0_12 = arith.constant 0 : index
      %24 = vector.load %arg13[%c0, %c0_12] : memref<1x128xf32, #tpu.memory_space<vmem>>, vector<1x128xf32>
      %cst = arith.constant 0.0833333358 : f32
      %25 = vector.broadcast %cst : f32 to vector<1x128xf32>
      %26 = arith.mulf %24, %25 : vector<1x128xf32>
      %c0_13 = arith.constant 0 : index
      %c0_14 = arith.constant 0 : index
      %27 = vector.load %arg14[%c0_13, %c0_14] : memref<1x128xf32, #tpu.memory_space<vmem>>, vector<1x128xf32>
      %cst_15 = arith.constant 0.0833333358 : f32
      %28 = vector.broadcast %cst_15 : f32 to vector<1x128xf32>
      %29 = arith.mulf %27, %28 : vector<1x128xf32>
      %30 = arith.mulf %26, %26 : vector<1x128xf32>
      %31 = arith.subf %29, %30 : vector<1x128xf32>
      %c0_16 = arith.constant 0 : index
      %c0_17 = arith.constant 0 : index
      %32 = vector.load %arg4[%c0_16, %c0_17] : memref<1x128xf32, #tpu.memory_space<vmem>>, vector<1x128xf32>
      %cst_18 = arith.constant 9.99999974E-6 : f32
      %33 = vector.broadcast %cst_18 : f32 to vector<1x128xf32>
      %34 = arith.addf %31, %33 : vector<1x128xf32>
      %35 = math.rsqrt %34 : vector<1x128xf32>
      %36 = arith.mulf %32, %35 : vector<1x128xf32>
      %c0_19 = arith.constant 0 : index
      %c0_20 = arith.constant 0 : index
      %37 = vector.load %arg13[%c0_19, %c0_20] : memref<1x128xf32, #tpu.memory_space<vmem>>, vector<1x128xf32>
      tpu.vector_store %arg13[%c0_19, %c0_20], %36 {strides = array<i32>} : memref<1x128xf32, #tpu.memory_space<vmem>>, vector<1x128xf32>,
      %c0_21 = arith.constant 0 : index
      %c0_22 = arith.constant 0 : index
      %38 = vector.load %arg5[%c0_21, %c0_22] : memref<1x128xf32, #tpu.memory_space<vmem>>, vector<1x128xf32>
      %39 = arith.mulf %26, %36 : vector<1x128xf32>
      %40 = arith.subf %38, %39 : vector<1x128xf32>
      %c0_23 = arith.constant 0 : index
      %c0_24 = arith.constant 0 : index
      %41 = vector.load %arg14[%c0_23, %c0_24] : memref<1x128xf32, #tpu.memory_space<vmem>>, vector<1x128xf32>
      tpu.vector_store %arg14[%c0_23, %c0_24], %40 {strides = array<i32>} : memref<1x128xf32, #tpu.memory_space<vmem>>, vector<1x128xf32>,
      %cst_25 = arith.constant 0.000000e+00 : f32
      %42 = vector.broadcast %cst_25 : f32 to vector<1x128xf32>
      %c0_26 = arith.constant 0 : index
      %c0_27 = arith.constant 0 : index
      %43 = vector.load %arg15[%c0_26, %c0_27] : memref<1x128xf32, #tpu.memory_space<vmem>>, vector<1x128xf32>
      tpu.vector_store %arg15[%c0_26, %c0_27], %42 {strides = array<i32>} : memref<1x128xf32, #tpu.memory_space<vmem>>, vector<1x128xf32>,
      %cst_28 = arith.constant 0.000000e+00 : f32
      %44 = vector.broadcast %cst_28 : f32 to vector<1x128xf32>
      %c0_29 = arith.constant 0 : index
      %c0_30 = arith.constant 0 : index
      %45 = vector.load %arg16[%c0_29, %c0_30] : memref<1x128xf32, #tpu.memory_space<vmem>>, vector<1x128xf32>
      tpu.vector_store %arg16[%c0_29, %c0_30], %44 {strides = array<i32>} : memref<1x128xf32, #tpu.memory_space<vmem>>, vector<1x128xf32>,
    } else {
    }
    %c2_i32 = arith.constant 2 : i32
    %10 = arith.cmpi eq, %arg0, %c2_i32 : i32
    %c0_i32_4 = arith.constant 0 : i32
    %11 = arith.cmpi eq, %arg1, %c0_i32_4 : i32
    %12 = arith.andi %10, %11 : i1
    %13 = arith.extui %12 : i1 to i32
    %c0_i32_5 = arith.constant 0 : i32
    %14 = arith.cmpi ne, %13, %c0_i32_5 : i32
    scf.if %14 {
      %c0 = arith.constant 0 : index
      %c0_12 = arith.constant 0 : index
      %24 = vector.load %arg15[%c0, %c0_12] : memref<1x128xf32, #tpu.memory_space<vmem>>, vector<1x128xf32>
      %cst = arith.constant 0.0833333358 : f32
      %25 = vector.broadcast %cst : f32 to vector<1x128xf32>
      %26 = arith.mulf %24, %25 : vector<1x128xf32>
      %c0_13 = arith.constant 0 : index
      %c0_14 = arith.constant 0 : index
      %27 = vector.load %arg16[%c0_13, %c0_14] : memref<1x128xf32, #tpu.memory_space<vmem>>, vector<1x128xf32>
      %cst_15 = arith.constant 0.0833333358 : f32
      %28 = vector.broadcast %cst_15 : f32 to vector<1x128xf32>
      %29 = arith.mulf %27, %28 : vector<1x128xf32>
      %30 = arith.mulf %26, %26 : vector<1x128xf32>
      %31 = arith.subf %29, %30 : vector<1x128xf32>
      %c0_16 = arith.constant 0 : index
      %c0_17 = arith.constant 0 : index
      %32 = vector.load %arg7[%c0_16, %c0_17] : memref<1x128xf32, #tpu.memory_space<vmem>>, vector<1x128xf32>
      %cst_18 = arith.constant 9.99999974E-6 : f32
      %33 = vector.broadcast %cst_18 : f32 to vector<1x128xf32>
      %34 = arith.addf %31, %33 : vector<1x128xf32>
      %35 = math.rsqrt %34 : vector<1x128xf32>
      %36 = arith.mulf %32, %35 : vector<1x128xf32>
      %c0_19 = arith.constant 0 : index
      %c0_20 = arith.constant 0 : index
      %37 = vector.load %arg15[%c0_19, %c0_20] : memref<1x128xf32, #tpu.memory_space<vmem>>, vector<1x128xf32>
      tpu.vector_store %arg15[%c0_19, %c0_20], %36 {strides = array<i32>} : memref<1x128xf32, #tpu.memory_space<vmem>>, vector<1x128xf32>,
      %c0_21 = arith.constant 0 : index
      %c0_22 = arith.constant 0 : index
      %38 = vector.load %arg8[%c0_21, %c0_22] : memref<1x128xf32, #tpu.memory_space<vmem>>, vector<1x128xf32>
      %39 = arith.mulf %26, %36 : vector<1x128xf32>
      %40 = arith.subf %38, %39 : vector<1x128xf32>
      %c0_23 = arith.constant 0 : index
      %c0_24 = arith.constant 0 : index
      %41 = vector.load %arg16[%c0_23, %c0_24] : memref<1x128xf32, #tpu.memory_space<vmem>>, vector<1x128xf32>
      tpu.vector_store %arg16[%c0_23, %c0_24], %40 {strides = array<i32>} : memref<1x128xf32, #tpu.memory_space<vmem>>, vector<1x128xf32>,
    } else {
    }
    %c0_i32_6 = arith.constant 0 : i32
    %15 = arith.cmpi eq, %arg0, %c0_i32_6 : i32
    %16 = arith.extui %15 : i1 to i32
    %c0_i32_7 = arith.constant 0 : i32
    %17 = arith.cmpi ne, %16, %c0_i32_7 : i32
    scf.if %17 {
      %c0 = arith.constant 0 : index
      %c0_12 = arith.constant 0 : index
      %24 = vector.load %arg2[%c0, %c0_12] : memref<16x128xbf16, #tpu.memory_space<vmem>>, vector<16x128xbf16>
      %c0_13 = arith.constant 0 : index
      %c0_14 = arith.constant 0 : index
      %25 = vector.load %arg3[%c0_13, %c0_14] : memref<128x128xbf16, #tpu.memory_space<vmem>>, vector<128x128xbf16>
      %cst = arith.constant dense<0.000000e+00> : vector<16x128xf32>
      %26 = tpu.matmul %24, %25, %cst {dimension_numbers = #tpu.dot_dimension_numbers<[1], [0], [0], [1], [0, 0, 1, 1], [], []>} : vector<16x128xbf16>, vector<128x128xbf16>, vector<16x128xf32> -> vector<16x128xf32>
      %27 = arith.index_cast %arg1 : i32 to index
      %c0_15 = arith.constant 0 : index
      %c0_16 = arith.constant 0 : index
      %28 = vector.load %arg12[%27, %c0_15, %c0_16] : memref<1x16x128xf32, #tpu.memory_space<vmem>>, vector<1x16x128xf32>
      %29 = vector.shape_cast %28 : vector<1x16x128xf32> to vector<16x128xf32>
      %30 = vector.shape_cast %26 : vector<16x128xf32> to vector<1x16x128xf32>
      tpu.vector_store %arg12[%27, %c0_15, %c0_16], %30 {strides = array<i32>} : memref<1x16x128xf32, #tpu.memory_space<vmem>>, vector<1x16x128xf32>,
      %c0_17 = arith.constant 0 : index
      %c0_18 = arith.constant 0 : index
      %31 = vector.load %arg13[%c0_17, %c0_18] : memref<1x128xf32, #tpu.memory_space<vmem>>, vector<1x128xf32>
      %cst_19 = arith.constant dense<0.000000e+00> : vector<128xf32>
      %32 = vector.multi_reduction <add>, %26, %cst_19 [0] : vector<16x128xf32> to vector<128xf32>
      %33 = vector.shape_cast %32 : vector<128xf32> to vector<1x128xf32>
      %34 = arith.addf %31, %33 : vector<1x128xf32>
      %c0_20 = arith.constant 0 : index
      %c0_21 = arith.constant 0 : index
      %35 = vector.load %arg13[%c0_20, %c0_21] : memref<1x128xf32, #tpu.memory_space<vmem>>, vector<1x128xf32>
      tpu.vector_store %arg13[%c0_20, %c0_21], %34 {strides = array<i32>} : memref<1x128xf32, #tpu.memory_space<vmem>>, vector<1x128xf32>,
      %c0_22 = arith.constant 0 : index
      %c0_23 = arith.constant 0 : index
      %36 = vector.load %arg14[%c0_22, %c0_23] : memref<1x128xf32, #tpu.memory_space<vmem>>, vector<1x128xf32>
      %37 = arith.mulf %26, %26 : vector<16x128xf32>
      %cst_24 = arith.constant dense<0.000000e+00> : vector<128xf32>
      %38 = vector.multi_reduction <add>, %37, %cst_24 [0] : vector<16x128xf32> to vector<128xf32>
      %39 = vector.shape_cast %38 : vector<128xf32> to vector<1x128xf32>
      %40 = arith.addf %36, %39 : vector<1x128xf32>
      %c0_25 = arith.constant 0 : index
      %c0_26 = arith.constant 0 : index
      %41 = vector.load %arg14[%c0_25, %c0_26] : memref<1x128xf32, #tpu.memory_space<vmem>>, vector<1x128xf32>
      tpu.vector_store %arg14[%c0_25, %c0_26], %40 {strides = array<i32>} : memref<1x128xf32, #tpu.memory_space<vmem>>, vector<1x128xf32>,
    } else {
    }
    %c1_i32_8 = arith.constant 1 : i32
    %18 = arith.cmpi eq, %arg0, %c1_i32_8 : i32
    %19 = arith.extui %18 : i1 to i32
    %c0_i32_9 = arith.constant 0 : i32
    %20 = arith.cmpi ne, %19, %c0_i32_9 : i32
    scf.if %20 {
      %24 = arith.index_cast %arg1 : i32 to index
      %c0 = arith.constant 0 : index
      %c0_12 = arith.constant 0 : index
      %25 = vector.load %arg12[%24, %c0, %c0_12] : memref<1x16x128xf32, #tpu.memory_space<vmem>>, vector<1x16x128xf32>
      %26 = vector.shape_cast %25 : vector<1x16x128xf32> to vector<16x128xf32>
      %c0_13 = arith.constant 0 : index
      %c0_14 = arith.constant 0 : index
      %27 = vector.load %arg13[%c0_13, %c0_14] : memref<1x128xf32, #tpu.memory_space<vmem>>, vector<1x128xf32>
      %28 = vector.broadcast %27 : vector<1x128xf32> to vector<16x128xf32>
      %29 = arith.mulf %26, %28 : vector<16x128xf32>
      %c0_15 = arith.constant 0 : index
      %c0_16 = arith.constant 0 : index
      %30 = vector.load %arg14[%c0_15, %c0_16] : memref<1x128xf32, #tpu.memory_space<vmem>>, vector<1x128xf32>
      %31 = vector.broadcast %30 : vector<1x128xf32> to vector<16x128xf32>
      %32 = arith.addf %29, %31 : vector<16x128xf32>
      %cst = arith.constant 0.000000e+00 : f32
      %33 = vector.broadcast %cst : f32 to vector<16x128xf32>
      %34 = arith.maximumf %32, %33 : vector<16x128xf32>
      %35 = tpu.iota {dimensions = array<i32: 0>} : vector<16x1xi32>
      %c16_i32 = arith.constant 16 : i32
      %36 = arith.muli %arg1, %c16_i32 : i32
      %37 = vector.broadcast %36 : i32 to vector<16x1xi32>
      %38 = arith.addi %35, %37 : vector<16x1xi32>
      %c12_i32 = arith.constant 12 : i32
      %39 = vector.broadcast %c12_i32 : i32 to vector<16x1xi32>
      %40 = arith.cmpi slt, %38, %39 : vector<16x1xi32>
      %cst_17 = arith.constant 0.000000e+00 : f32
      %41 = vector.shape_cast %40 : vector<16x1xi1> to vector<16x1xi1>
      %42 = vector.broadcast %41 : vector<16x1xi1> to vector<16x128xi1>
      %43 = vector.broadcast %cst_17 : f32 to vector<16x128xf32>
      %44 = arith.select %42, %34, %43 : vector<16x128xi1>, vector<16x128xf32>
      %45 = arith.truncf %44 : vector<16x128xf32> to vector<16x128xbf16>
      %c0_18 = arith.constant 0 : index
      %c0_19 = arith.constant 0 : index
      %46 = vector.load %arg6[%c0_18, %c0_19] : memref<128x128xbf16, #tpu.memory_space<vmem>>, vector<128x128xbf16>
      %cst_20 = arith.constant dense<0.000000e+00> : vector<16x128xf32>
      %47 = tpu.matmul %45, %46, %cst_20 {dimension_numbers = #tpu.dot_dimension_numbers<[1], [0], [0], [1], [0, 0, 1, 1], [], []>} : vector<16x128xbf16>, vector<128x128xbf16>, vector<16x128xf32> -> vector<16x128xf32>
      %48 = arith.index_cast %arg1 : i32 to index
      %c0_21 = arith.constant 0 : index
      %c0_22 = arith.constant 0 : index
      %49 = vector.load %arg12[%48, %c0_21, %c0_22] : memref<1x16x128xf32, #tpu.memory_space<vmem>>, vector<1x16x128xf32>
      %50 = vector.shape_cast %49 : vector<1x16x128xf32> to vector<16x128xf32>
      %51 = vector.shape_cast %47 : vector<16x128xf32> to vector<1x16x128xf32>
      tpu.vector_store %arg12[%48, %c0_21, %c0_22], %51 {strides = array<i32>} : memref<1x16x128xf32, #tpu.memory_space<vmem>>, vector<1x16x128xf32>,
      %c0_23 = arith.constant 0 : index
      %c0_24 = arith.constant 0 : index
      %52 = vector.load %arg15[%c0_23, %c0_24] : memref<1x128xf32, #tpu.memory_space<vmem>>, vector<1x128xf32>
      %cst_25 = arith.constant dense<0.000000e+00> : vector<128xf32>
      %53 = vector.multi_reduction <add>, %47, %cst_25 [0] : vector<16x128xf32> to vector<128xf32>
      %54 = vector.shape_cast %53 : vector<128xf32> to vector<1x128xf32>
      %55 = arith.addf %52, %54 : vector<1x128xf32>
      %c0_26 = arith.constant 0 : index
      %c0_27 = arith.constant 0 : index
      %56 = vector.load %arg15[%c0_26, %c0_27] : memref<1x128xf32, #tpu.memory_space<vmem>>, vector<1x128xf32>
      tpu.vector_store %arg15[%c0_26, %c0_27], %55 {strides = array<i32>} : memref<1x128xf32, #tpu.memory_space<vmem>>, vector<1x128xf32>,
      %c0_28 = arith.constant 0 : index
      %c0_29 = arith.constant 0 : index
      %57 = vector.load %arg16[%c0_28, %c0_29] : memref<1x128xf32, #tpu.memory_space<vmem>>, vector<1x128xf32>
      %58 = arith.mulf %47, %47 : vector<16x128xf32>
      %cst_30 = arith.constant dense<0.000000e+00> : vector<128xf32>
      %59 = vector.multi_reduction <add>, %58, %cst_30 [0] : vector<16x128xf32> to vector<128xf32>
      %60 = vector.shape_cast %59 : vector<128xf32> to vector<1x128xf32>
      %61 = arith.addf %57, %60 : vector<1x128xf32>
      %c0_31 = arith.constant 0 : index
      %c0_32 = arith.constant 0 : index
      %62 = vector.load %arg16[%c0_31, %c0_32] : memref<1x128xf32, #tpu.memory_space<vmem>>, vector<1x128xf32>
      tpu.vector_store %arg16[%c0_31, %c0_32], %61 {strides = array<i32>} : memref<1x128xf32, #tpu.memory_space<vmem>>, vector<1x128xf32>,
    } else {
    }
    %c2_i32_10 = arith.constant 2 : i32
    %21 = arith.cmpi eq, %arg0, %c2_i32_10 : i32
    %22 = arith.extui %21 : i1 to i32
    %c0_i32_11 = arith.constant 0 : i32
    %23 = arith.cmpi ne, %22, %c0_i32_11 : i32
    scf.if %23 {
      %24 = arith.index_cast %arg1 : i32 to index
      %c0 = arith.constant 0 : index
      %c0_12 = arith.constant 0 : index
      %25 = vector.load %arg12[%24, %c0, %c0_12] : memref<1x16x128xf32, #tpu.memory_space<vmem>>, vector<1x16x128xf32>
      %26 = vector.shape_cast %25 : vector<1x16x128xf32> to vector<16x128xf32>
      %c0_13 = arith.constant 0 : index
      %c0_14 = arith.constant 0 : index
      %27 = vector.load %arg15[%c0_13, %c0_14] : memref<1x128xf32, #tpu.memory_space<vmem>>, vector<1x128xf32>
      %28 = vector.broadcast %27 : vector<1x128xf32> to vector<16x128xf32>
      %29 = arith.mulf %26, %28 : vector<16x128xf32>
      %c0_15 = arith.constant 0 : index
      %c0_16 = arith.constant 0 : index
      %30 = vector.load %arg16[%c0_15, %c0_16] : memref<1x128xf32, #tpu.memory_space<vmem>>, vector<1x128xf32>
      %31 = vector.broadcast %30 : vector<1x128xf32> to vector<16x128xf32>
      %32 = arith.addf %29, %31 : vector<16x128xf32>
      %cst = arith.constant 0.000000e+00 : f32
      %33 = vector.broadcast %cst : f32 to vector<16x128xf32>
      %34 = arith.maximumf %32, %33 : vector<16x128xf32>
      %c0_17 = arith.constant 0 : index
      %c0_18 = arith.constant 0 : index
      %35 = vector.load %arg9[%c0_17, %c0_18] : memref<1x128xbf16, #tpu.memory_space<vmem>>, vector<1x128xbf16>
      %36 = arith.truncf %34 : vector<16x128xf32> to vector<16x128xbf16>
      %cst_19 = arith.constant dense<0.000000e+00> : vector<1x16xf32>
      %37 = tpu.matmul %35, %36, %cst_19 {dimension_numbers = #tpu.dot_dimension_numbers<[1], [1], [0], [0], [0, 0, 1, 0], [], []>} : vector<1x128xbf16>, vector<16x128xbf16>, vector<1x16xf32> -> vector<1x16xf32>
      %c0_20 = arith.constant 0 : index
      %c0_21 = arith.constant 0 : index
      %38 = vector.load %arg10[%c0_20, %c0_21] : memref<1x1xf32, #tpu.memory_space<vmem>>, vector<1x1xf32>
      %39 = vector.broadcast %38 : vector<1x1xf32> to vector<1x16xf32>
      %40 = arith.addf %37, %39 : vector<1x16xf32>
      %c0_22 = arith.constant 0 : index
      %c0_23 = arith.constant 0 : index
      %41 = vector.load %arg11[%c0_22, %c0_23] : memref<1x16xf32, #tpu.memory_space<vmem>>, vector<1x16xf32>
      tpu.vector_store %arg11[%c0_22, %c0_23], %40 {strides = array<i32>} : memref<1x16xf32, #tpu.memory_space<vmem>>, vector<1x16xf32>,
    } else {
    }
    return
  }
  func.func @transform_0(%arg0: i32, %arg1: i32) -> (i32, i32) {
    %c0_i32 = arith.constant 0 : i32
    %0 = arith.cmpi eq, %arg0, %c0_i32 : i32
    %c0_i32_0 = arith.constant 0 : i32
    %1 = arith.select %0, %arg1, %c0_i32_0 : i32
    %c0_i32_1 = arith.constant 0 : i32
    %c0_i32_2 = arith.constant 0 : i32
    return %1, %c0_i32_1 : i32, i32
  }
  func.func @transform_1(%arg0: i32, %arg1: i32) -> (i32, i32) {
    %c0_i32 = arith.constant 0 : i32
    %c0_i32_0 = arith.constant 0 : i32
    %c0_i32_1 = arith.constant 0 : i32
    return %c0_i32, %c0_i32_0 : i32, i32
  }
  func.func @transform_2(%arg0: i32, %arg1: i32) -> (i32, i32) {
    %c0_i32 = arith.constant 0 : i32
    %c0_i32_0 = arith.constant 0 : i32
    %c0_i32_1 = arith.constant 0 : i32
    return %c0_i32, %c0_i32_0 : i32, i32
  }
  func.func @transform_3(%arg0: i32, %arg1: i32) -> (i32, i32) {
    %c0_i32 = arith.constant 0 : i32
    %c0_i32_0 = arith.constant 0 : i32
    %c0_i32_1 = arith.constant 0 : i32
    return %c0_i32, %c0_i32_0 : i32, i32
  }
  func.func @transform_4(%arg0: i32, %arg1: i32) -> (i32, i32) {
    %c0_i32 = arith.constant 0 : i32
    %c0_i32_0 = arith.constant 0 : i32
    %c0_i32_1 = arith.constant 0 : i32
    return %c0_i32, %c0_i32_0 : i32, i32
  }
  func.func @transform_5(%arg0: i32, %arg1: i32) -> (i32, i32) {
    %c0_i32 = arith.constant 0 : i32
    %c0_i32_0 = arith.constant 0 : i32
    %c0_i32_1 = arith.constant 0 : i32
    return %c0_i32, %c0_i32_0 : i32, i32
  }
  func.func @transform_6(%arg0: i32, %arg1: i32) -> (i32, i32) {
    %c0_i32 = arith.constant 0 : i32
    %c0_i32_0 = arith.constant 0 : i32
    %c0_i32_1 = arith.constant 0 : i32
    return %c0_i32, %c0_i32_0 : i32, i32
  }
  func.func @transform_7(%arg0: i32, %arg1: i32) -> (i32, i32) {
    %c0_i32 = arith.constant 0 : i32
    %c0_i32_0 = arith.constant 0 : i32
    %c0_i32_1 = arith.constant 0 : i32
    return %c0_i32, %c0_i32_0 : i32, i32
  }
  func.func @transform_8(%arg0: i32, %arg1: i32) -> (i32, i32) {
    %c0_i32 = arith.constant 0 : i32
    %c0_i32_0 = arith.constant 0 : i32
    %c0_i32_1 = arith.constant 0 : i32
    return %c0_i32, %c0_i32_0 : i32, i32
  }
  func.func @transform_9(%arg0: i32, %arg1: i32) -> (i32, i32) {
    %c2_i32 = arith.constant 2 : i32
    %0 = arith.cmpi eq, %arg0, %c2_i32 : i32
    %c0_i32 = arith.constant 0 : i32
    %1 = arith.select %0, %arg1, %c0_i32 : i32
    %c0_i32_0 = arith.constant 0 : i32
    %c0_i32_1 = arith.constant 0 : i32
    return %c0_i32_0, %1 : i32, i32
  }
}

</mosaic_0001>

<bundles_post_ra>
// kernel: tpu_custom_call.1
= control target key start
LH: loop header
LB: loop body
LE: loop exit
PB: predicated region body
PF: predicated region fallthrough
CT: control target
= control target key end

     0   :  { %s1583_s0 = inlined_call_operand.hbm [shape: bf16[16,128], index: 0, kind: input, shape index: {}]   ;;  %s1584_s1 = inlined_call_operand.hbm [shape: bf16[128,128], index: 1, kind: input, shape index: {}]   ;;  %s1585_s2 = inlined_call_operand.vmem [shape: f32[1,128], index: 2, kind: input, shape index: {}]   ;;  %s1586_s3 = inlined_call_operand.vmem [shape: f32[1,128], index: 3, kind: input, shape index: {}]   ;;  %s1587_s4 = inlined_call_operand.hbm [shape: bf16[128,128], index: 4, kind: input, shape index: {}]   ;;  %s1588_s5 = inlined_call_operand.vmem [shape: f32[1,128], index: 5, kind: input, shape index: {}]   ;;  %s1589_s6 = inlined_call_operand.vmem [shape: f32[1,128], index: 6, kind: input, shape index: {}]   ;;  %s1590_s7 = inlined_call_operand.vmem [shape: bf16[1,128], index: 7, kind: input, shape index: {}]   ;;  %s1591_s8 = inlined_call_operand.<no memory space> [shape: f32[1,1], index: 8, kind: input, shape index: {}]   ;;  %s1592_s9 = inlined_call_operand.hbm [shape: f32[1,16], index: 9, kind: output, shape index: {}]  }
   0x1   :  { %v14_v0 = vstv %s1591_s8 }
   0x2   :  { %15 = vst [vmem:[#allocation7] sm:$0x1] %v14_v0 }
   0x3   :  { %16 = vsyncpa [#allocation9], 0 }
   0x4   :  { %18 = vsyncpa [#allocation9 + $0x1], 0 }
   0x5   :  { %19 = vsyncpa [#allocation12], 0 }
   0x6   :  { %20 = vsyncpa [#allocation10], 0 }
   0x7   :  { %22 = vsyncpa [#allocation10 + $0x1], 0  ;;  %s1399_s11 = smov 0   ;;  %s1401_s12 = smov 0  }
   0x8   :  { %s1403_s13 = smov 0  }
   0x9 LB: > { %s967_s8 = sadd.s32 4294967295, %s1328_s13   ;;  %s968_s14 = sadd.s32 4294967294, %s1328_s13   ;;  %s1328_s13 = sphi %s1403_s13, %s28_s13   ;;  %s1324_s12 = sphi %s1401_s12, %s1606_s12   ;;  %s1320_s11 = sphi %s1399_s11, %s1605_s11  }
   0xa   : > { %s40_s15 = sadd.s32 1, %s1324_s12  ;;  %p969_p0 = scmp.ge.s32.totalorder %s1328_s13, 1 }
   0xb   : > { %p42_p1 = scmp.ge.s32.totalorder %s40_s15, 3  ;;  %p273_p2 = scmp.lt.s32.totalorder %s1328_s13, 4 }
   0xc   : > { %p1421_p3 = scmp.eq.s32.totalorder %s967_s8, 0  ;;  %s1330_s18 = smov [#allocation11]  }
   0xd   : > { %s1608_s15 = smov (%p42_p1, %s40_s15), 0  ;;  %p1427_p4 = pnand %p969_p0, %p273_p2 }
   0xe   : > { %s1596_s16 = scalar_select %p1421_p3, 1, 0 }
   0xf   : > { %s1597_s17 = scalar_select %p1427_p4, 1, 0 }
  0x10   : > { %s285_s19 = sshll.u32 %s1330_s18, 4  ;;  %p1097_p5 = pneg %p1427_p4  ;;  %s286_s19 = int_to_ptr.vmem [resolvable:$true] %s285_s19 }
  0x11   : > { %s1331_s21 = smov [#allocation13]   ;;  %s1184_s25 = scalar_lea.hbm %s1584_s1, 1024 }
  0x12   : > { %p1435_p6 = pnand %p1421_p3, %p1097_p5  ;;  %s304_s22 = sshll.u32 %s1331_s21, 4  ;;  %s305_s22 = int_to_ptr.vmem [resolvable:$true] %s304_s22 }
  0x13   : > { %p1185_p8 = scmp.ne.s32.totalorder %s1584_s1, %s1184_s25  ;;  %p1191_p12 = scmp.lt.u32.totalorder %s1184_s25, %s1584_s1 }
  0x14   : > { %p1186_p9 = pneg %p1435_p6 }
  0x16   : > { %p1187_p10 = pnand %p1186_p9, %p1185_p8 }
  0x18   : > { %p1188_p11 = pneg %p1187_p10 }
  0x1a   : > { %p1193_p13 = pnand %p1191_p12, %p1188_p11 }
  0x1c   : > { %1196 = shalt.err (!%p1193_p13)
}
  0x1d   : > { %s1197_s30 = scalar_lea.vmem %s286_s19, 1024  ;;  %p1205_p5 = scmp.lt.s32.totalorder %s286_s19, %s286_s19 }
  0x1e   : > { %p1198_p0 = scmp.ne.s32.totalorder %s286_s19, %s1197_s30  ;;  %p1206_p7 = scmp.lt.s32.totalorder %s1197_s30, %s1197_s30 }
  0x20   : > { %p1200_p1 = pnand %p1198_p0, %p1186_p9  ;;  %p1207_p3 = por %p1206_p7, %p1205_p5 }
  0x22   : > { %p1201_p2 = pneg %p1200_p1 }
  0x24   : > { %p1208_p4 = pnand %p1207_p3, %p1201_p2 }
  0x26   : > { %1211 = shalt.err (!%p1208_p4)
}
  0x27   : > { %s1332_s10 = smov 64   ;;  %s1333_s18 = smov 4  }
  0x28   : > { %1100 = dma.hbm_to_vmem [thread:$0]  (!%p1435_p6), %s1584_s1, 1024, %s286_s19, [#allocation12], %s1332_s10, %s1332_s10, %s1333_s18  }
  0x29   : > { %s1212_s26 = scalar_lea.hbm %s1587_s4, 1024 }
  0x2a   : > { %p1213_p3 = scmp.ne.s32.totalorder %s1587_s4, %s1212_s26  ;;  %p1219_p10 = scmp.lt.u32.totalorder %s1212_s26, %s1587_s4 }
  0x2c   : > { %p1215_p4 = pnand %p1213_p3, %p1186_p9 }
  0x2e   : > { %p1216_p7 = pneg %p1215_p4 }
  0x30   : > { %p1221_p11 = pnand %p1219_p10, %p1216_p7 }
  0x32   : > { %1224 = shalt.err (!%p1221_p11)
}
  0x33   : > { %s1225_s19 = scalar_lea.vmem %s305_s22, 1024  ;;  %p1233_p1 = scmp.lt.s32.totalorder %s305_s22, %s305_s22 }
  0x34   : > { %p1226_p12 = scmp.ne.s32.totalorder %s305_s22, %s1225_s19  ;;  %p1234_p2 = scmp.lt.s32.totalorder %s1225_s19, %s1225_s19 }
  0x36   : > { %p1228_p13 = pnand %p1226_p12, %p1186_p9  ;;  %p1235_p5 = por %p1234_p2, %p1233_p1 }
  0x38   : > { %p1229_p0 = pneg %p1228_p13 }
  0x3a   : > { %p1236_p8 = pnand %p1235_p5, %p1229_p0 }
  0x3c   : > { %1239 = shalt.err (!%p1236_p8)
}
  0x3d   : > { %1103 = dma.hbm_to_vmem [thread:$0]  (!%p1435_p6), %s1587_s4, 1024, %s305_s22, [#allocation12], %s1332_s10, %s1332_s10, %s1333_s18  }
  0x3e   : > { %p1599_p3 = scmp.lt.s32.totalorder %s1328_s13, 3  ;;  %p1600_p4 = scmp.eq.s32.totalorder %s1328_s13, 0 }
  0x3f   : > { %s1334_s25 = smov [#allocation8]   ;;  %s1240_s28 = scalar_lea.hbm %s1583_s0, 128 }
  0x40   : > { %p1493_p9 = pnand %p1600_p4, %p1599_p3  ;;  %s343_s26 = sshll.u32 %s1334_s25, 4  ;;  %s344_s26 = int_to_ptr.vmem [resolvable:$true] %s343_s26 }
  0x41   : > { %p1241_p8 = scmp.ne.s32.totalorder %s1583_s0, %s1240_s28  ;;  %p1247_p11 = scmp.lt.u32.totalorder %s1240_s28, %s1583_s0 }
  0x42   : > { %p1242_p6 = pneg %p1493_p9 }
  0x44   : > { %p1243_p7 = pnand %p1242_p6, %p1241_p8 }
  0x46   : > { %p1244_p10 = pneg %p1243_p7 }
  0x48   : > { %p1249_p12 = pnand %p1247_p11, %p1244_p10 }
  0x4a   : > { %1252 = shalt.err (!%p1249_p12)
}
  0x4b   : > { %s1253_s21 = scalar_lea.vmem %s344_s26, 128  ;;  %s1260_s23 = scalar_lea.vmem %s344_s26, 256 }
  0x4c   : > { %p1254_p13 = scmp.ne.s32.totalorder %s344_s26, %s1253_s21  ;;  %p1261_p2 = scmp.lt.s32.totalorder %s344_s26, %s344_s26 }
  0x4d   : > { %p1262_p5 = scmp.lt.s32.totalorder %s1260_s23, %s1253_s21 }
  0x4e   : > { %p1256_p0 = pnand %p1254_p13, %p1242_p6 }
  0x4f   : > { %p1263_p3 = por %p1262_p5, %p1261_p2 }
  0x50   : > { %p1257_p1 = pneg %p1256_p0 }
  0x52   : > { %p1264_p4 = pnand %p1263_p3, %p1257_p1 }
  0x54   : > { %1267 = shalt.err (!%p1264_p4)
}
  0x55   : > { %1107 = dma.hbm_to_vmem [thread:$0]  (!%p1493_p9), %s1583_s0, 128, %s344_s26, [#allocation9], %s1332_s10, %s1332_s10, %s1333_s18  }
  0x56   : > { %p1602_p8 = scmp.ne.s32.totalorder %s1597_s17, 0 }
  0x57   : > { %p1603_p6 = scmp.ne.s32.totalorder (!%p1602_p8), %s1596_s16, 0 }
  0x58   : > { %355 = sbr.rel (%p1602_p8) target bundleno = 955 (0x3bb), region = 56 }
  0x5f   : > { %1307 = dma.done.wait (%p1603_p6), [#allocation9], 128  }
  0x60   : > { %1309 = vsyncadd (%p1603_p6), [#allocation9], 4294967168 }
  0x61   : > { %1311 = dma.done.wait (%p1603_p6), [#allocation12], 2048  }
  0x62   : > { %1313 = vsyncadd (%p1603_p6), [#allocation12], 4294965248  ;;  %p409_p7 = scmp.eq.s32.totalorder %s1320_s11, 0 }
  0x63   : > { %v1335_v1 = vmov (%p409_p7), 0.0  }
  0x64   : > { %414 = sbr.rel (!%p409_p7) target bundleno = 107 (0x6b), region = 72  ;;  %415 = vst [vmem:[#allocation3] sm:$0x1] (%p409_p7), %v1335_v1  ;;  %416 = vst [vmem:[#allocation4] sm:$0x1] (%p409_p7), %v1335_v1 }
  0x6b PF: > { %p417_p9 = scmp.eq.s32.totalorder %s1320_s11, 1 }
  0x6c   : > { %v422_v2 = vld [vmem:[#allocation3] sm:$0x1] (%p417_p9)  ;;  %v424_v3 = vld [vmem:[#allocation4] sm:$0x1] (%p417_p9)  ;;  %v1336_v7 = vmov (%p417_p9), 0.0  }
  0x6d   : > { %421 = sbr.rel (!%p417_p9) target bundleno = 135 (0x87), region = 76  ;;  %v423_v4 = vmul.f32 (%p417_p9), 0.083333336, %v422_v2  ;;  %v425_v5 = vmul.f32 (%p417_p9), 0.083333336, %v424_v3 }
  0x6e   : > { %437 = vst [vmem:[#allocation5] sm:$0x1] (%p417_p9), %v1336_v7  ;;  %438 = vst [vmem:[#allocation6] sm:$0x1] (%p417_p9), %v1336_v7  ;;  %v428_v10 = vld [vmem:[%s1585_s2] sm:$0x1] (%p417_p9) }
  0x6f   : > { %v426_v6 = vmul.f32 (%p417_p9), %v423_v4, %v423_v4  ;;  %v433_v13 = vld [vmem:[%s1586_s3] sm:$0x1] (%p417_p9) }
  0x71   : > { %v427_v8 = vsub.f32 (%p417_p9), %v425_v5, %v426_v6 }
  0x73   : > { %v429_v9 = vadd.f32 (%p417_p9), 1e-05, %v427_v8 }
  0x75   : > { %1162 = vrsqrt.f32 %v429_v9 }
  0x7f   : > { %v1163_v11 = vpop.eup %1162 }
  0x80   : > { %v431_v12 = vmul.f32 %v1163_v11, %v428_v10 }
  0x82   : > { %432 = vst [vmem:[#allocation3] sm:$0x1] %v431_v12  ;;  %v434_v14 = vmul.f32 %v431_v12, %v423_v4 }
  0x84   : > { %v435_v15 = vsub.f32 %v433_v13, %v434_v14 }
  0x86   : > { %436 = vst [vmem:[#allocation4] sm:$0x1] %v435_v15 }
  0x87 PF: > { %p439_p10 = scmp.eq.s32.totalorder %s1320_s11, 2 }
  0x88   : > { %v444_v16 = vld [vmem:[#allocation5] sm:$0x1] (%p439_p10)  ;;  %v446_v17 = vld [vmem:[#allocation6] sm:$0x1] (%p439_p10)  ;;  %v450_v23 = vld [vmem:[%s1588_s5] sm:$0x1] (%p439_p10) }
  0x89   : > { %443 = sbr.rel (!%p439_p10) target bundleno = 163 (0xa3), region = 80  ;;  %v445_v18 = vmul.f32 (%p439_p10), 0.083333336, %v444_v16  ;;  %v447_v19 = vmul.f32 (%p439_p10), 0.083333336, %v446_v17 }
  0x8a   : > { %v455_v26 = vld [vmem:[%s1589_s6] sm:$0x1] (%p439_p10) }
  0x8b   : > { %v448_v20 = vmul.f32 (%p439_p10), %v445_v18, %v445_v18 }
  0x8d   : > { %v449_v21 = vsub.f32 (%p439_p10), %v447_v19, %v448_v20 }
  0x8f   : > { %v451_v22 = vadd.f32 (%p439_p10), 1e-05, %v449_v21 }
  0x91   : > { %1164 = vrsqrt.f32 %v451_v22 }
  0x9b   : > { %v1165_v24 = vpop.eup %1164 }
  0x9c   : > { %v453_v25 = vmul.f32 %v1165_v24, %v450_v23 }
  0x9e   : > { %454 = vst [vmem:[#allocation5] sm:$0x1] %v453_v25  ;;  %v456_v27 = vmul.f32 %v453_v25, %v445_v18 }
  0xa0   : > { %v457_v28 = vsub.f32 %v455_v26, %v456_v27 }
  0xa2   : > { %458 = vst [vmem:[#allocation6] sm:$0x1] %v457_v28 }
  0xa3 PF: > { %p981_p11 = scmp.ne.s32.totalorder %s1320_s11, 0 }
  0xa4   : > { %v1166_v29 = vld [vmem:[#allocation11] sm:$0xff] (!%p981_p11)   ;;  %v1337_v30 = vmov (!%p981_p11), 0.0   ;;  %v1167_v31 = vld [vmem:[#allocation11 + $0x8] sm:$0xff] (!%p981_p11)   ;;  %vm1338_vm0 = vmmov (!%p981_p11), 0   ;;  %v1168_v32 = vld [vmem:[#allocation11 + $0x10] sm:$0xff] (!%p981_p11)  }
  0xa5   : > { %461 = sbr.rel (%p981_p11) target bundleno = 430 (0x1ae), region = 84  ;;  %1035 = vmatprep.subr.bf16.mxu0 (!%p981_p11), %v1337_v30  ;;  %1051 = vmatprep.mubr.msk.bf16.mxu0 (!%p981_p11), %vm1338_vm0, %v1337_v30  ;;  %v1169_v33 = vld [vmem:[#allocation11 + $0x18] sm:$0xff] (!%p981_p11)   ;;  %v1170_v34 = vld [vmem:[#allocation11 + $0x20] sm:$0xff] (!%p981_p11)   ;;  %v1171_v35 = vld [vmem:[#allocation11 + $0x28] sm:$0xff] (!%p981_p11)  }
  0xa6   : > { %1036 = vmatpush3.bf16.msra.mxu0 (!%p981_p11), %v1166_v29  ;;  %v1172_v36 = vld [vmem:[#allocation11 + $0x30] sm:$0xff] (!%p981_p11)   ;;  %v1173_v37 = vld [vmem:[#allocation11 + $0x38] sm:$0xff] (!%p981_p11)   ;;  %v579_v56 = vld [vmem:[#allocation3] sm:$0x1] (!%p981_p11) }
  0xa7   : > { %1037 = vmatprep.subr.bf16.mxu0 (!%p981_p11), %v1337_v30  ;;  %v1174_v38 = vld [vmem:[#allocation8] sm:$0xff] (!%p981_p11)   ;;  %v589_v59 = vld [vmem:[#allocation4] sm:$0x1] (!%p981_p11) }
  0xaa   : > { %1038 = vmatpush3.bf16.msra.mxu0 (!%p981_p11), %v1167_v31 }
  0xab   : > { %1039 = vmatprep.subr.bf16.mxu0 (!%p981_p11), %v1337_v30 }
  0xae   : > { %1040 = vmatpush3.bf16.msra.mxu0 %v1168_v32 }
  0xaf   : > { %1041 = vmatprep.subr.bf16.mxu0 %v1337_v30 }
  0xb2   : > { %1042 = vmatpush3.bf16.msra.mxu0 %v1169_v33 }
  0xb3   : > { %1043 = vmatprep.subr.bf16.mxu0 %v1337_v30 }
  0xb6   : > { %1044 = vmatpush3.bf16.msra.mxu0 %v1170_v34 }
  0xb7   : > { %1045 = vmatprep.subr.bf16.mxu0 %v1337_v30 }
  0xba   : > { %1046 = vmatpush3.bf16.msra.mxu0 %v1171_v35 }
  0xbb   : > { %1047 = vmatprep.subr.bf16.mxu0 %v1337_v30 }
  0xbe   : > { %1048 = vmatpush3.bf16.msra.mxu0 %v1172_v36 }
  0xbf   : > { %1049 = vmatprep.subr.bf16.mxu0 %v1337_v30 }
  0xc2   : > { %1050 = vmatpush3.bf16.msra.mxu0 %v1173_v37 }
  0xc5   : > { %1052 = vmatmul.mubr.bf16.vlgmr.msra.gmra.mrb[0].mxu0 %v1174_v38 }
 0x198   : > { %v568_v39 = vpop.f32.mrb[0].mxu0 }
 0x199   : > { %577 = vst [vmem:[#allocation2] sm:$0xff] %v568_v39  ;;  %v1053_v40 = vpop.f32.mrb[1].mxu0  ;;  %v590_v42 = vmul.f32 %v568_v39, %v568_v39 }
 0x19a   : > { %v571_v41 = vpop.f32.mrb[2].mxu0 }
 0x19b   : > { %578 = vst [vmem:[#allocation2 + $0x8] sm:$0xff] %v571_v41  ;;  %v580_v43 = vadd.f32 %v571_v41, %v568_v39  ;;  %v591_v44 = vmul.f32 %v571_v41, %v571_v41  ;;  %v1054_v45 = vpop.f32.mrb[3].mxu0 }
 0x19d   : > { %v581_v46 = vrot.slane %v580_v43, 4  ;;  %v592_v47 = vadd.f32 %v591_v44, %v590_v42 }
 0x19f   : > { %v582_v48 = vadd.f32 %v581_v46, %v580_v43  ;;  %v593_v49 = vrot.slane %v592_v47, 4 }
 0x1a1   : > { %v583_v50 = vrot.slane %v582_v48, 2  ;;  %v594_v51 = vadd.f32 %v593_v49, %v592_v47 }
 0x1a3   : > { %v584_v52 = vadd.f32 %v583_v50, %v582_v48  ;;  %v595_v53 = vrot.slane %v594_v51, 2 }
 0x1a5   : > { %v585_v54 = vrot.slane %v584_v52, 1  ;;  %v596_v55 = vadd.f32 %v595_v53, %v594_v51 }
 0x1a7   : > { %v586_v57 = vadd.f32 %v585_v54, %v584_v52  ;;  %v597_v58 = vrot.slane %v596_v55, 1 }
 0x1a9   : > { %v587_v60 = vadd.f32 %v586_v57, %v579_v56  ;;  %v598_v61 = vadd.f32 %v597_v58, %v596_v55 }
 0x1ab   : > { %588 = vst [vmem:[#allocation3] sm:$0x1] %v587_v60  ;;  %v599_v62 = vadd.f32 %v598_v61, %v589_v59 }
 0x1ad   : > { %600 = vst [vmem:[#allocation4] sm:$0x1] %v599_v62 }
 0x1ae PF: > { %p991_p12 = scmp.ne.s32.totalorder %s1320_s11, 1 }
 0x1af   : > { %v1175_v63 = vld [vmem:[#allocation13] sm:$0xff] (!%p991_p12)   ;;  %v1339_v0 = vmov (!%p991_p12), 0.0   ;;  %v1176_v1 = vld [vmem:[#allocation13 + $0x8] sm:$0xff] (!%p991_p12)   ;;  %vm1340_vm1 = vmmov (!%p991_p12), 0   ;;  %v1177_v2 = vld [vmem:[#allocation13 + $0x10] sm:$0xff] (!%p991_p12)   ;;  %v628_v8 = vlaneseq (!%p991_p12)  ;;  %vm1341_vm3 = vmmov (!%p991_p12), 1  }
 0x1b0   : > { %603 = sbr.rel (%p991_p12) target bundleno = 697 (0x2b9), region = 88  ;;  %1055 = vmatprep.subr.bf16.mxu0 (!%p991_p12), %v1339_v0  ;;  %1071 = vmatprep.mubr.msk.bf16.mxu0 (!%p991_p12), %vm1340_vm1, %v1339_v0  ;;  %v1178_v3 = vld [vmem:[#allocation13 + $0x18] sm:$0xff] (!%p991_p12)   ;;  %v1179_v4 = vld [vmem:[#allocation13 + $0x20] sm:$0xff] (!%p991_p12)   ;;  %v1180_v11 = vld [vmem:[#allocation13 + $0x28] sm:$0xff] (!%p991_p12)  }
 0x1b1   : > { %1056 = vmatpush3.bf16.msra.mxu0 (!%p991_p12), %v1175_v63  ;;  %v606_v5 = vld [vmem:[#allocation2] sm:$0xff] (!%p991_p12)  ;;  %v607_v6 = vld [vmem:[#allocation2 + $0x8] sm:$0xff] (!%p991_p12)  ;;  %v629_v13 = vshrl.u32 (!%p991_p12), %v628_v8, 7  ;;  %v1181_v16 = vld [vmem:[#allocation13 + $0x30] sm:$0xff] (!%p991_p12)  }
 0x1b2   : > { %1057 = vmatprep.subr.bf16.mxu0 (!%p991_p12), %v1339_v0  ;;  %v992_v7 = vld [vmem:[#allocation3] ss:$0 sm:$0xff] (!%p991_p12)  ;;  %v1182_v20 = vld [vmem:[#allocation13 + $0x38] sm:$0xff] (!%p991_p12)   ;;  %v750_v39 = vld [vmem:[#allocation5] sm:$0x1] (!%p991_p12) }
 0x1b3   : > { %v615_v9 = vmul.f32 (!%p991_p12), %v992_v7, %v606_v5  ;;  %v616_v10 = vmul.f32 (!%p991_p12), %v992_v7, %v607_v6  ;;  %v630_v17 = vadd.s32 (!%p991_p12), 8, %v629_v13  ;;  %v760_v42 = vld [vmem:[#allocation6] sm:$0x1] (!%p991_p12) }
 0x1b4   : > { %v993_v12 = vld [vmem:[#allocation4] ss:$0 sm:$0xff] (!%p991_p12) }
 0x1b5   : > { %1058 = vmatpush3.bf16.msra.mxu0 (!%p991_p12), %v1176_v1  ;;  %v624_v14 = vadd.f32 (!%p991_p12), %v993_v12, %v615_v9  ;;  %v625_v15 = vadd.f32 (!%p991_p12), %v993_v12, %v616_v10  ;;  %vm635_vm2 = vcmp.lt.s32.totalorder (!%p991_p12), %v630_v17, 12 }
 0x1b6   : > { %1059 = vmatprep.subr.bf16.mxu0 (!%p991_p12), %v1339_v0  ;;  %vm1002_vm4 = vmpackc.low (!%p991_p12), %vm635_vm2, %vm1341_vm3 }
 0x1b7   : > { %v626_v18 = vmax.f32 %v624_v14, 0.0  ;;  %v627_v19 = vmax.f32 %v625_v15, 0.0 }
 0x1b9   : > { %1060 = vmatpush3.bf16.msra.mxu0 %v1177_v2  ;;  %v1003_v21 = vpack.c.bf16 %v627_v19, %v626_v18 }
 0x1ba   : > { %1061 = vmatprep.subr.bf16.mxu0 %v1339_v0 }
 0x1bd   : > { %1062 = vmatpush3.bf16.msra.mxu0 %v1178_v3 }
 0x1be   : > { %1063 = vmatprep.subr.bf16.mxu0 %v1339_v0 }
 0x1c1   : > { %1064 = vmatpush3.bf16.msra.mxu0 %v1179_v4 }
 0x1c2   : > { %1065 = vmatprep.subr.bf16.mxu0 %v1339_v0 }
 0x1c5   : > { %1066 = vmatpush3.bf16.msra.mxu0 %v1180_v11 }
 0x1c6   : > { %1067 = vmatprep.subr.bf16.mxu0 %v1339_v0 }
 0x1c9   : > { %1068 = vmatpush3.bf16.msra.mxu0 %v1181_v16 }
 0x1ca   : > { %1069 = vmatprep.subr.bf16.mxu0 %v1339_v0 }
 0x1cd   : > { %1070 = vmatpush3.bf16.msra.mxu0 %v1182_v20 }
 0x1d0   : > { %1072 = vmatmul.mubr.msk.bf16.vlgmr.msra.gmra.mrb[0].mxu0 %vm1002_vm4, %v1003_v21 }
 0x2a3   : > { %v741_v22 = vpop.f32.mrb[0].mxu0 }
 0x2a4   : > { %748 = vst [vmem:[#allocation2] sm:$0xff] %v741_v22  ;;  %v1073_v23 = vpop.f32.mrb[1].mxu0  ;;  %v761_v25 = vmul.f32 %v741_v22, %v741_v22 }
 0x2a5   : > { %v744_v24 = vpop.f32.mrb[2].mxu0 }
 0x2a6   : > { %749 = vst [vmem:[#allocation2 + $0x8] sm:$0xff] %v744_v24  ;;  %v751_v26 = vadd.f32 %v744_v24, %v741_v22  ;;  %v762_v27 = vmul.f32 %v744_v24, %v744_v24  ;;  %v1074_v28 = vpop.f32.mrb[3].mxu0 }
 0x2a8   : > { %v752_v29 = vrot.slane %v751_v26, 4  ;;  %v763_v30 = vadd.f32 %v762_v27, %v761_v25 }
 0x2aa   : > { %v753_v31 = vadd.f32 %v752_v29, %v751_v26  ;;  %v764_v32 = vrot.slane %v763_v30, 4 }
 0x2ac   : > { %v754_v33 = vrot.slane %v753_v31, 2  ;;  %v765_v34 = vadd.f32 %v764_v32, %v763_v30 }
 0x2ae   : > { %v755_v35 = vadd.f32 %v754_v33, %v753_v31  ;;  %v766_v36 = vrot.slane %v765_v34, 2 }
 0x2b0   : > { %v756_v37 = vrot.slane %v755_v35, 1  ;;  %v767_v38 = vadd.f32 %v766_v36, %v765_v34 }
 0x2b2   : > { %v757_v40 = vadd.f32 %v756_v37, %v755_v35  ;;  %v768_v41 = vrot.slane %v767_v38, 1 }
 0x2b4   : > { %v758_v43 = vadd.f32 %v757_v40, %v750_v39  ;;  %v769_v44 = vadd.f32 %v768_v41, %v767_v38 }
 0x2b6   : > { %759 = vst [vmem:[#allocation5] sm:$0x1] %v758_v43  ;;  %v770_v45 = vadd.f32 %v769_v44, %v760_v42 }
 0x2b8   : > { %771 = vst [vmem:[#allocation6] sm:$0x1] %v770_v45 }
 0x2b9 PF: > { %p1005_p13 = scmp.ne.s32.totalorder %s1320_s11, 2 }
 0x2ba   : > { %v777_v46 = vld [vmem:[#allocation2] sm:$0xff] (!%p1005_p13)  ;;  %v778_v47 = vld [vmem:[#allocation2 + $0x8] sm:$0xff] (!%p1005_p13)  ;;  %v1342_v49 = vmov (!%p1005_p13), 0.0   ;;  %vm1343_vm5 = vmmov (!%p1005_p13), 0   ;;  %v1344_v53 = vmov (!%p1005_p13), 0   ;;  %v807_v61 = vlaneseq (!%p1005_p13) }
 0x2bb   : > { %774 = sbr.rel (%p1005_p13) target bundleno = 932 (0x3a4), region = 92  ;;  %1075 = vmatprep.subr.bf16.mxu0 (!%p1005_p13), %v1342_v49  ;;  %1077 = vmatprep.mubr.msk.bf16.mxu0 (!%p1005_p13), %vm1343_vm5, %v1342_v49  ;;  %v801_v54 = vld [vmem:[#allocation7] sm:$0x1] (!%p1005_p13)  ;;  %v799_v60 = vld [vmem:[%s1590_s7] sm:$0x1] (!%p1005_p13)  ;;  %vm851_vm6 = vcmask (!%p1005_p13), 122880  }
 0x2bc   : > { %1183 = vset.pattern.permute.xlu0 (!%p1005_p13), %v1344_v53  ;;  %v808_v62 = vshrl.u32 (!%p1005_p13), %v807_v61, 7 }
 0x2bd   : > { %v1006_v48 = vld [vmem:[#allocation5] ss:$0 sm:$0xff] (!%p1005_p13)  ;;  %804 = vperm.xlu0 (!%p1005_p13), %1183, %v801_v54  }
 0x2be   : > { %v786_v50 = vmul.f32 (!%p1005_p13), %v1006_v48, %v777_v46  ;;  %v787_v51 = vmul.f32 (!%p1005_p13), %v1006_v48, %v778_v47  ;;  %v809_v63 = vsub.s32 (!%p1005_p13), 0, %v808_v62 }
 0x2bf   : > { %v1007_v52 = vld [vmem:[#allocation6] ss:$0 sm:$0xff] (!%p1005_p13) }
 0x2c0   : > { %v795_v55 = vadd.f32 (!%p1005_p13), %v1007_v52, %v786_v50  ;;  %v796_v56 = vadd.f32 (!%p1005_p13), %v1007_v52, %v787_v51 }
 0x2c2   : > { %v797_v57 = vmax.f32 %v795_v55, 0.0  ;;  %v798_v58 = vmax.f32 %v796_v56, 0.0 }
 0x2c4   : > { %v800_v59 = vpack.c.bf16 %v798_v58, %v797_v57 }
 0x2c6   : > { %1076 = vmatpush3.bf16.xpose.msra.mxu0 %v800_v59 }
 0x2cd   : > { %1078 = vmatmul.mubr.bf16.vlgmr.msra.gmra.mrb[0].mxu0 %v799_v60 }
 0x33c   : > { %v805_v0 = vpop.permute.xlu0 %804 }
 0x33d   : > { %v810_v1 = vrot.slane %v805_v0, %v809_v63 }
 0x3a0   : > { %v845_v2 = vpop.f32.mrb[0].mxu0 }
 0x3a1   : > { %v846_v3 = vadd.f32 %v845_v2, %v810_v1  ;;  %v1079_v4 = vpop.f32.mrb[1].mxu0 }
 0x3a2   : > { %v848_v5 = vpop.f32.mrb[2].mxu0 }
 0x3a3   : > { %852 = vst.msk [vmem:[#allocation14] sm:$0x1] %vm851_vm6, %v846_v3  ;;  %v1080_v6 = vpop.f32.mrb[3].mxu0 }
 0x3a4 PF: > { %p1549_p0 = scmp.eq.s32.totalorder %s967_s8, 2  ;;  %s1345_s22 = smov [#allocation14]  }
 0x3a5   : > { %s868_s19 = sshll.u32 %s1345_s22, 4  ;;  %s869_s19 = int_to_ptr.vmem [resolvable:$true] %s868_s19 }
 0x3a6   : > { %s1268_s21 = scalar_lea.vmem %s869_s19, 16  ;;  %s1274_s23 = scalar_lea.vmem %s869_s19, 32 }
 0x3a7   : > { %p1269_p1 = scmp.ne.s32.totalorder %s869_s19, %s1268_s21  ;;  %p1275_p3 = scmp.lt.s32.totalorder %s869_s19, %s869_s19 }
 0x3a8   : > { %p1276_p4 = scmp.lt.s32.totalorder %s1274_s23, %s1268_s21 }
 0x3a9   : > { %p1270_p2 = pnand %p1269_p1, %p1549_p0 }
 0x3aa   : > { %p1277_p8 = por %p1276_p4, %p1275_p3 }
 0x3ab   : > { %p1271_p5 = pneg %p1270_p2 }
 0x3ad   : > { %p1278_p6 = pnand %p1277_p8, %p1271_p5 }
 0x3af   : > { %1281 = shalt.err (!%p1278_p6)
}
 0x3b0   : > { %s1282_s20 = scalar_lea.hbm %s1592_s9, 16 }
 0x3b1   : > { %p1283_p7 = scmp.ne.s32.totalorder %s1592_s9, %s1282_s20  ;;  %p1288_p11 = scmp.lt.u32.totalorder %s1282_s20, %s1592_s9 }
 0x3b3   : > { %p1284_p9 = pnand %p1283_p7, %p1549_p0 }
 0x3b5   : > { %p1285_p10 = pneg %p1284_p9 }
 0x3b7   : > { %p1290_p12 = pnand %p1288_p11, %p1285_p10 }
 0x3b9   : > { %1293 = shalt.err (!%p1290_p12)
}
 0x3ba   : > { %1094 = dma.vmem_to_hbm [thread:$0]  (%p1549_p0), %s869_s19, 16, %s1592_s9, [#allocation10]  }
 0x3bb PF: > { %p1120_p13 = scmp.ge.s32.totalorder %s1328_s13, 2  ;;  %p1121_p1 = scmp.eq.s32.totalorder %s968_s14, 2 }
 0x3bd   : > { %p1109_p2 = pnand %p1121_p1, %p1120_p13 }
 0x3bf   : > { %1315 = dma.done.wait (!%p1109_p2), [#allocation10], 16  }
 0x3c0   : > { %1317 = vsyncadd (!%p1109_p2), [#allocation10], 4294967280  ;;  %s28_s13 = sadd.s32 1, %s1328_s13   ;;  %s1605_s11 = smov %s1324_s12 }
 0x3c1   : > { %p25_p5 = scmp.ge.s32.totalorder %s28_s13, 5   ;;  %s1606_s12 = smov %s1608_s15 }
 0x3c3   :  { %27 = sbr.rel (!%p25_p5) target bundleno = 9 (0x9), region = 136 }
 0x3ca   :  { %885 = vsyncpa [#allocation9], 1 }
 0x3cb   :  { %887 = vsyncpa [#allocation9 + $0x1], 1 }
 0x3cc   :  { %888 = vsyncpa [#allocation12], 1 }
 0x3cd   :  { %889 = vsyncpa [#allocation10], 1 }
 0x3ce   :  { %891 = vsyncpa [#allocation10 + $0x1], 1 }

</bundles_post_ra>
